<compile_context>
chip_gen: v7x
topology: tpu7x:2x2x1
jax: 0.10.0
libtpu: 0.0.40
codegen_flags: <defaults>
</compile_context>

<pallas_src>
import functools

import jax
import jax.numpy as jnp
from jax.experimental import pallas as pl
from jax.experimental.pallas import tpu as pltpu


def em_ae_kernel(x_ref, weT_ref, be_ref, wdT_ref, bd_ref,
                 out_ref, mse_ref, assign_ref, *, K, D, chunk):
    """One grid step: reconstruct a (tile_n, D) slab of rows with K fused AEs.

    Works feature-major (features on sublanes, batch rows on lanes): per-row
    error reductions and the mse/assign outputs are lane-dense, and x_out is
    stored as (D, tile_n) with no in-kernel output transpose.
    """
    tile_n = x_ref.shape[0]
    inv_d = jnp.float32(1.0 / D)

    # Static inner chunk loop: keeps ~50 live f32 vregs at chunk=256 while the
    # DMA tile (tile_n) stays large enough to amortize per-grid-step overhead.
    n_chunks = pl.cdiv(tile_n, chunk)
    for c in range(n_chunks):
        col0 = c * chunk
        width = min(chunk, tile_n - col0)

        # (width, D) -> (D, width).  This transpose is required anyway to form
        # recon - x in feature-major orientation; it is the only XLU transpose
        # left in the kernel (the output transpose was removed).
        xt = jnp.transpose(x_ref[pl.ds(col0, width), :].astype(jnp.float32))

        # Fused encoder for all K AEs: one MXU push, (K*H, D) @ (D, width).
        h_all = jnp.dot(weT_ref[...], xt, preferred_element_type=jnp.float32)
        h_all = jnp.maximum(h_all + be_ref[...], 0.0)

        # Fused decoder: block-diagonal (K*D, K*H) @ (K*H, width) gives all K
        # reconstructions in a single MXU push.
        recon_all = jnp.dot(wdT_ref[...], h_all,
                            preferred_element_type=jnp.float32) + bd_ref[...]

        # Argmin over K on per-row SUM of squared error (mean deferred; argmin
        # is scale invariant).  Initialize from AE 0: no inf fill, no select
        # round for k=0.  Strict '<' keeps the earliest k on ties, matching
        # torch.max over -err.  (Garbage/NaN in padded columns of a partial
        # final block compares false, stays on AE 0, and is discarded by the
        # wrapper slice -- no cross-column contamination.)
        best_recon = recon_all[0:D, :]
        d0 = best_recon - xt
        best_sse = jnp.sum(d0 * d0, axis=0, keepdims=True)        # (1, width)
        best_k = jnp.zeros((1, width), dtype=jnp.int32)
        for k in range(1, K):                       # K small & static: unroll
            r_k = recon_all[k * D:(k + 1) * D, :]
            d_k = r_k - xt
            sse = jnp.sum(d_k * d_k, axis=0, keepdims=True)
            take = sse < best_sse
            best_recon = jnp.where(take, r_k, best_recon)
            best_k = jnp.where(take, jnp.int32(k), best_k)
            best_sse = jnp.where(take, sse, best_sse)

        # Lane-dense stores for every output (no masked 32-lane vst).
        out_ref[0, :, pl.ds(col0, width)] = best_recon.astype(out_ref.dtype)
        mse_ref[0, :, pl.ds(col0, width)] = best_sse * inv_d
        assign_ref[0, :, pl.ds(col0, width)] = best_k


def pack_em_ae_params(We, be, Wd, bd):
    """One-time host-side repack (hoist out of the per-call path).

    We: (K, D, H), be: (K, 1, H), Wd: (K, H, D), bd: (K, 1, D).
    Returns (weT, be_col, wd_block, bd_col) in the layouts the kernel consumes:
      weT      (K*H, D)    fused encoder weights (transposed)
      be_col   (K*H, 1)    fused encoder bias (column)
      wd_block (K*D, K*H)  block-diagonal decoder weights (transposed)
      bd_col   (K*D, 1)    fused decoder bias (column)
    """
    K, D, H = We.shape
    weT = jnp.transpose(We, (0, 2, 1)).reshape(K * H, D)
    be_col = be.reshape(K * H, 1)
    wdT = jnp.transpose(Wd, (0, 2, 1))                           # (K, D, H)
    wd_block = jnp.zeros((K * D, K * H), dtype=Wd.dtype)
    for k in range(K):
        wd_block = wd_block.at[k * D:(k + 1) * D, k * H:(k + 1) * H].set(wdT[k])
    bd_col = bd.reshape(K * D, 1)
    return weT, be_col, wd_block, bd_col


def em_ae_forward(x, packed, *, tile_n=2048, chunk=256):
    """Returns (x_out [N, D], recon_mse [N], cluster_assignment [N])."""
    weT, be_col, wd_block, bd_col = packed
    N, D = x.shape
    K = wd_block.shape[0] // D
    H = weT.shape[0] // K

    # Batch tiles: large to amortize per-grid-step overhead, clamped to N; if a
    # single tile would cover a large N, split in two so the "parallel" grid
    # axis shards across v7x's two TensorCores.
    tile_n = min(tile_n, N)
    if tile_n == N and N >= 1024:
        tile_n = ((pl.cdiv(N, 2) + 7) // 8) * 8
    grid_n = pl.cdiv(N, tile_n)
    chunk = min(chunk, tile_n)

    kernel = functools.partial(em_ae_kernel, K=K, D=D, chunk=chunk)

    out_shape = (
        jax.ShapeDtypeStruct((grid_n, D, tile_n), x.dtype),       # x_out slab
        jax.ShapeDtypeStruct((grid_n, 1, tile_n), jnp.float32),   # mse slab
        jax.ShapeDtypeStruct((grid_n, 1, tile_n), jnp.int32),     # assign slab
    )

    out_slab, mse_slab, assign_slab = pl.pallas_call(
        kernel,
        out_shape=out_shape,
        grid=(grid_n,),
        in_specs=[
            pl.BlockSpec((tile_n, D), lambda i: (i, 0)),          # x tile
            # Weight/bias blocks: constant index_map -> resident across grid.
            pl.BlockSpec((K * H, D), lambda i: (0, 0)),           # fused We^T
            pl.BlockSpec((K * H, 1), lambda i: (0, 0)),           # fused be
            pl.BlockSpec((K * D, K * H), lambda i: (0, 0)),       # blockdiag Wd^T
            pl.BlockSpec((K * D, 1), lambda i: (0, 0)),           # fused bd
        ],
        out_specs=[
            pl.BlockSpec((1, D, tile_n), lambda i: (i, 0, 0)),
            pl.BlockSpec((1, 1, tile_n), lambda i: (i, 0, 0)),
            pl.BlockSpec((1, 1, tile_n), lambda i: (i, 0, 0)),
        ],
        compiler_params=pltpu.CompilerParams(
            dimension_semantics=("parallel",)),
    )(x, weT, be_col, wd_block, bd_col)

    # Single wrapper relayout back to row-major (a consumer that accepts the
    # feature-major (D, N) form could skip this transpose entirely).
    x_out = out_slab.transpose(0, 2, 1).reshape(grid_n * tile_n, D)[:N]
    recon_mse = mse_slab.reshape(grid_n * tile_n)[:N]
    assign = assign_slab.reshape(grid_n * tile_n)[:N]
    return x_out, recon_mse, assign


def em_ae_reference(x, We, be, Wd, bd):
    """Plain-JAX reference mirroring EM_AE_V1.forward semantics."""
    K = We.shape[0]
    errs, recons = [], []
    for k in range(K):
        h = jnp.maximum(x @ We[k] + be[k], 0.0)
        r = h @ Wd[k] + bd[k]
        recons.append(r)
        errs.append(jnp.mean((r - x) ** 2, axis=-1))
    errs = jnp.stack(errs)            # [K, N]
    recons = jnp.stack(recons)        # [K, N, D]
    assign = jnp.argmax(-errs, axis=0)
    x_out = jnp.take_along_axis(recons, assign[None, :, None], axis=0)[0]
    return x_out, -jnp.max(-errs, axis=0), assign


if __name__ == "__main__":
    key = jax.random.PRNGKey(0)
    N, D, H, K = 72, 32, 8, 3        # small shapes; forward implies x: [N, D]

    k_x, k_we, k_be, k_wd, k_bd = jax.random.split(key, 5)
    x = jax.random.normal(k_x, (N, D), dtype=jnp.float32)
    We = 0.1 * jax.random.normal(k_we, (K, D, H), dtype=jnp.float32)
    be = 0.1 * jax.random.normal(k_be, (K, 1, H), dtype=jnp.float32)
    Wd = 0.1 * jax.random.normal(k_wd, (K, H, D), dtype=jnp.float32)
    bd = 0.1 * jax.random.normal(k_bd, (K, 1, D), dtype=jnp.float32)

    ref_out, ref_mse, ref_assign = em_ae_reference(x, We, be, Wd, bd)
    packed = pack_em_ae_params(We, be, Wd, bd)   # one-time repack

    # Three configs: (a) default large tile clamped to N (single grid step),
    # (b) small tile -> multi-step grid with a partial final block,
    # (c) full tile with a small inner chunk -> exercises the chunk loop + tail.
    for tn, ck in ((2048, 256), (16, 256), (72, 16)):
        x_out, recon_mse, assign = em_ae_forward(x, packed, tile_n=tn, chunk=ck)
        jax.block_until_ready((x_out, recon_mse, assign))
        assert jnp.allclose(x_out, ref_out, atol=1e-5, rtol=1e-5)
        assert jnp.allclose(recon_mse, ref_mse, atol=1e-5, rtol=1e-5)
        assert jnp.all(assign == ref_assign.astype(jnp.int32))

    # TODO(synk): train_step / sample_E (multinomial E-step sampling) and the
    # per-AE optimizer plumbing are training-only host logic, not forward.
    print("KERNEL_OK")
</pallas_src>

<mosaic_0001>
module attributes {stable_mosaic.version = 11 : i64} {
  func.func @em_ae_kernel(%arg0: i32, %arg1: memref<72x32xf32, #tpu.memory_space<vmem>>, %arg2: memref<24x32xf32, #tpu.memory_space<vmem>>, %arg3: memref<24x1xf32, #tpu.memory_space<vmem>>, %arg4: memref<96x24xf32, #tpu.memory_space<vmem>>, %arg5: memref<96x1xf32, #tpu.memory_space<vmem>>, %arg6: memref<1x32x72xf32, #tpu.memory_space<vmem>>, %arg7: memref<1x1x72xf32, #tpu.memory_space<vmem>>, %arg8: memref<1x1x72xi32, #tpu.memory_space<vmem>>) attributes {dimension_semantics = [#tpu.dimension_semantics<parallel>], iteration_bounds = array<i64: 1>, scalar_prefetch = 0 : i64, scratch_operands = 0 : i64, tpu.core_type = #tpu.core_type<tc>, window_params = [{transform_indices = @transform_0, window_bounds = array<i64: 72, 32>}, {pipeline_mode = #tpu.pipeline_mode<synchronous>, transform_indices = @transform_1, window_bounds = array<i64: 24, 32>}, {pipeline_mode = #tpu.pipeline_mode<synchronous>, transform_indices = @transform_2, window_bounds = array<i64: 24, 1>}, {pipeline_mode = #tpu.pipeline_mode<synchronous>, transform_indices = @transform_3, window_bounds = array<i64: 96, 24>}, {pipeline_mode = #tpu.pipeline_mode<synchronous>, transform_indices = @transform_4, window_bounds = array<i64: 96, 1>}, {transform_indices = @transform_5, window_bounds = array<i64: 1, 32, 72>}, {transform_indices = @transform_6, window_bounds = array<i64: 1, 1, 72>}, {transform_indices = @transform_7, window_bounds = array<i64: 1, 1, 72>}]} {
    %c0 = arith.constant 0 : index
    %c0_0 = arith.constant 0 : index
    %0 = vector.load %arg1[%c0, %c0_0] : memref<72x32xf32, #tpu.memory_space<vmem>>, vector<72x32xf32>
    %1 = tpu.transpose %0, [1, 0] : vector<72x32xf32> -> vector<32x72xf32>
    %c0_1 = arith.constant 0 : index
    %c0_2 = arith.constant 0 : index
    %2 = vector.load %arg2[%c0_1, %c0_2] : memref<24x32xf32, #tpu.memory_space<vmem>>, vector<24x32xf32>
    %cst = arith.constant dense<0.000000e+00> : vector<24x72xf32>
    %3 = tpu.matmul %2, %1, %cst {dimension_numbers = #tpu.dot_dimension_numbers<[1], [0], [0], [1], [0, 0, 1, 1], [], []>} : vector<24x32xf32>, vector<32x72xf32>, vector<24x72xf32> -> vector<24x72xf32>
    %c0_3 = arith.constant 0 : index
    %c0_4 = arith.constant 0 : index
    %4 = vector.load %arg3[%c0_3, %c0_4] : memref<24x1xf32, #tpu.memory_space<vmem>>, vector<24x1xf32>
    %5 = vector.broadcast %4 : vector<24x1xf32> to vector<24x72xf32>
    %6 = arith.addf %3, %5 : vector<24x72xf32>
    %cst_5 = arith.constant 0.000000e+00 : f32
    %7 = vector.broadcast %cst_5 : f32 to vector<24x72xf32>
    %8 = arith.maximumf %6, %7 : vector<24x72xf32>
    %c0_6 = arith.constant 0 : index
    %c0_7 = arith.constant 0 : index
    %9 = vector.load %arg4[%c0_6, %c0_7] : memref<96x24xf32, #tpu.memory_space<vmem>>, vector<96x24xf32>
    %cst_8 = arith.constant dense<0.000000e+00> : vector<96x72xf32>
    %10 = tpu.matmul %9, %8, %cst_8 {dimension_numbers = #tpu.dot_dimension_numbers<[1], [0], [0], [1], [0, 0, 1, 1], [], []>} : vector<96x24xf32>, vector<24x72xf32>, vector<96x72xf32> -> vector<96x72xf32>
    %c0_9 = arith.constant 0 : index
    %c0_10 = arith.constant 0 : index
    %11 = vector.load %arg5[%c0_9, %c0_10] : memref<96x1xf32, #tpu.memory_space<vmem>>, vector<96x1xf32>
    %12 = vector.broadcast %11 : vector<96x1xf32> to vector<96x72xf32>
    %13 = arith.addf %10, %12 : vector<96x72xf32>
    %14 = vector.extract_strided_slice %13 {offsets = [0, 0], sizes = [32, 72], strides = [1, 1]} : vector<96x72xf32> to vector<32x72xf32>
    %15 = arith.subf %14, %1 : vector<32x72xf32>
    %16 = arith.mulf %15, %15 : vector<32x72xf32>
    %cst_11 = arith.constant dense<0.000000e+00> : vector<72xf32>
    %17 = vector.multi_reduction <add>, %16, %cst_11 [0] : vector<32x72xf32> to vector<72xf32>
    %18 = vector.shape_cast %17 : vector<72xf32> to vector<1x72xf32>
    %c0_i32 = arith.constant 0 : i32
    %19 = vector.broadcast %c0_i32 : i32 to vector<1x72xi32>
    %20 = vector.extract_strided_slice %13 {offsets = [32, 0], sizes = [32, 72], strides = [1, 1]} : vector<96x72xf32> to vector<32x72xf32>
    %21 = arith.subf %20, %1 : vector<32x72xf32>
    %22 = arith.mulf %21, %21 : vector<32x72xf32>
    %cst_12 = arith.constant dense<0.000000e+00> : vector<72xf32>
    %23 = vector.multi_reduction <add>, %22, %cst_12 [0] : vector<32x72xf32> to vector<72xf32>
    %24 = vector.shape_cast %23 : vector<72xf32> to vector<1x72xf32>
    %25 = arith.cmpf olt, %24, %18 : vector<1x72xf32>
    %26 = vector.shape_cast %25 : vector<1x72xi1> to vector<1x72xi1>
    %27 = vector.broadcast %26 : vector<1x72xi1> to vector<32x72xi1>
    %28 = arith.select %27, %20, %14 : vector<32x72xi1>, vector<32x72xf32>
    %c1_i32 = arith.constant 1 : i32
    %29 = vector.broadcast %c1_i32 : i32 to vector<1x72xi32>
    %30 = arith.select %25, %29, %19 : vector<1x72xi1>, vector<1x72xi32>
    %31 = arith.select %25, %24, %18 : vector<1x72xi1>, vector<1x72xf32>
    %32 = vector.extract_strided_slice %13 {offsets = [64, 0], sizes = [32, 72], strides = [1, 1]} : vector<96x72xf32> to vector<32x72xf32>
    %33 = arith.subf %32, %1 : vector<32x72xf32>
    %34 = arith.mulf %33, %33 : vector<32x72xf32>
    %cst_13 = arith.constant dense<0.000000e+00> : vector<72xf32>
    %35 = vector.multi_reduction <add>, %34, %cst_13 [0] : vector<32x72xf32> to vector<72xf32>
    %36 = vector.shape_cast %35 : vector<72xf32> to vector<1x72xf32>
    %37 = arith.cmpf olt, %36, %31 : vector<1x72xf32>
    %38 = vector.shape_cast %37 : vector<1x72xi1> to vector<1x72xi1>
    %39 = vector.broadcast %38 : vector<1x72xi1> to vector<32x72xi1>
    %40 = arith.select %39, %32, %28 : vector<32x72xi1>, vector<32x72xf32>
    %c2_i32 = arith.constant 2 : i32
    %41 = vector.broadcast %c2_i32 : i32 to vector<1x72xi32>
    %42 = arith.select %37, %41, %30 : vector<1x72xi1>, vector<1x72xi32>
    %43 = arith.select %37, %36, %31 : vector<1x72xi1>, vector<1x72xf32>
    %c0_14 = arith.constant 0 : index
    %c0_15 = arith.constant 0 : index
    %c0_16 = arith.constant 0 : index
    %44 = vector.load %arg6[%c0_14, %c0_15, %c0_16] : memref<1x32x72xf32, #tpu.memory_space<vmem>>, vector<1x32x72xf32>
    %45 = vector.shape_cast %44 : vector<1x32x72xf32> to vector<32x72xf32>
    %46 = vector.shape_cast %40 : vector<32x72xf32> to vector<1x32x72xf32>
    tpu.vector_store %arg6[%c0_14, %c0_15, %c0_16], %46 {strides = array<i32>} : memref<1x32x72xf32, #tpu.memory_space<vmem>>, vector<1x32x72xf32>,
    %cst_17 = arith.constant 3.125000e-02 : f32
    %47 = vector.broadcast %cst_17 : f32 to vector<1x72xf32>
    %48 = arith.mulf %43, %47 : vector<1x72xf32>
    %c0_18 = arith.constant 0 : index
    %c0_19 = arith.constant 0 : index
    %c0_20 = arith.constant 0 : index
    %49 = vector.load %arg7[%c0_18, %c0_19, %c0_20] : memref<1x1x72xf32, #tpu.memory_space<vmem>>, vector<1x1x72xf32>
    %50 = vector.shape_cast %49 : vector<1x1x72xf32> to vector<1x72xf32>
    %51 = vector.shape_cast %48 : vector<1x72xf32> to vector<1x1x72xf32>
    tpu.vector_store %arg7[%c0_18, %c0_19, %c0_20], %51 {strides = array<i32>} : memref<1x1x72xf32, #tpu.memory_space<vmem>>, vector<1x1x72xf32>,
    %c0_21 = arith.constant 0 : index
    %c0_22 = arith.constant 0 : index
    %c0_23 = arith.constant 0 : index
    %52 = vector.load %arg8[%c0_21, %c0_22, %c0_23] : memref<1x1x72xi32, #tpu.memory_space<vmem>>, vector<1x1x72xi32>
    %53 = vector.shape_cast %52 : vector<1x1x72xi32> to vector<1x72xi32>
    %54 = vector.shape_cast %42 : vector<1x72xi32> to vector<1x1x72xi32>
    tpu.vector_store %arg8[%c0_21, %c0_22, %c0_23], %54 {strides = array<i32>} : memref<1x1x72xi32, #tpu.memory_space<vmem>>, vector<1x1x72xi32>,
    return
  }
  func.func @transform_0(%arg0: i32) -> (i32, i32) {
    %c0_i32 = arith.constant 0 : i32
    %c0_i32_0 = arith.constant 0 : i32
    return %arg0, %c0_i32 : i32, i32
  }
  func.func @transform_1(%arg0: i32) -> (i32, i32) {
    %c0_i32 = arith.constant 0 : i32
    %c0_i32_0 = arith.constant 0 : i32
    %c0_i32_1 = arith.constant 0 : i32
    return %c0_i32, %c0_i32_0 : i32, i32
  }
  func.func @transform_2(%arg0: i32) -> (i32, i32) {
    %c0_i32 = arith.constant 0 : i32
    %c0_i32_0 = arith.constant 0 : i32
    %c0_i32_1 = arith.constant 0 : i32
    return %c0_i32, %c0_i32_0 : i32, i32
  }
  func.func @transform_3(%arg0: i32) -> (i32, i32) {
    %c0_i32 = arith.constant 0 : i32
    %c0_i32_0 = arith.constant 0 : i32
    %c0_i32_1 = arith.constant 0 : i32
    return %c0_i32, %c0_i32_0 : i32, i32
  }
  func.func @transform_4(%arg0: i32) -> (i32, i32) {
    %c0_i32 = arith.constant 0 : i32
    %c0_i32_0 = arith.constant 0 : i32
    %c0_i32_1 = arith.constant 0 : i32
    return %c0_i32, %c0_i32_0 : i32, i32
  }
  func.func @transform_5(%arg0: i32) -> (i32, i32, i32) {
    %c0_i32 = arith.constant 0 : i32
    %c0_i32_0 = arith.constant 0 : i32
    %c0_i32_1 = arith.constant 0 : i32
    return %arg0, %c0_i32, %c0_i32_0 : i32, i32, i32
  }
  func.func @transform_6(%arg0: i32) -> (i32, i32, i32) {
    %c0_i32 = arith.constant 0 : i32
    %c0_i32_0 = arith.constant 0 : i32
    %c0_i32_1 = arith.constant 0 : i32
    return %arg0, %c0_i32, %c0_i32_0 : i32, i32, i32
  }
  func.func @transform_7(%arg0: i32) -> (i32, i32, i32) {
    %c0_i32 = arith.constant 0 : i32
    %c0_i32_0 = arith.constant 0 : i32
    %c0_i32_1 = arith.constant 0 : i32
    return %arg0, %c0_i32, %c0_i32_0 : i32, i32, i32
  }
}

</mosaic_0001>

<bundles_post_ra>
// kernel: tpu_custom_call.1
= control target key start
LH: loop header
LB: loop body
LE: loop exit
PB: predicated region body
PF: predicated region fallthrough
CT: control target
= control target key end

     0   :  { %13 = vsyncpa [#allocation3], 0  ;;  %s1084_s0 = inlined_call_operand.vmem [shape: f32[72,32], index: 0, kind: input, shape index: {}]   ;;  %s1085_s1 = inlined_call_operand.vmem [shape: f32[24,32], index: 1, kind: input, shape index: {}]   ;;  %s1086_s2 = inlined_call_operand.vmem [shape: f32[24,1], index: 2, kind: input, shape index: {}]   ;;  %s1087_s3 = inlined_call_operand.vmem [shape: f32[96,24], index: 3, kind: input, shape index: {}]   ;;  %s1088_s4 = inlined_call_operand.vmem [shape: f32[96,1], index: 4, kind: input, shape index: {}]   ;;  %s1089_s5 = inlined_call_operand.hbm [shape: f32[1,32,72], index: 5, kind: output, shape index: {0}]   ;;  %s1090_s6 = inlined_call_operand.hbm [shape: f32[1,1,72], index: 6, kind: output, shape index: {1}]   ;;  %s1091_s7 = inlined_call_operand.hbm [shape: s32[1,1,72], index: 7, kind: output, shape index: {2}]  }
   0x1   :  { %v25_v0 = vld [vmem:[%s1084_s0] sm:$0xff]  ;;  %v26_v1 = vld [vmem:[%s1084_s0 + $0x8] sm:$0xff] }
   0x2   :  { %34 = vxpose.xlu0.b32.start [1/9] (short) (narrow) %v25_v0, 32 }
   0x3   :  { %14 = vsyncpa [#allocation5], 0  ;;  %v27_v2 = vld [vmem:[%s1084_s0 + $0x10] sm:$0xff]  ;;  %v731_v3 = vmov 0.0|0.0   ;;  %v28_v4 = vld [vmem:[%s1084_s0 + $0x18] sm:$0xff]  ;;  %vm732_vm0 = vmmov 0  }
   0x4   :  { %636 = vmatprep.subr.bf16.mxu0 %v731_v3  ;;  %v29_v5 = vld [vmem:[%s1084_s0 + $0x20] sm:$0xff]  ;;  %v733_v6 = vmov 0.0   ;;  %v30_v7 = vld [vmem:[%s1084_s0 + $0x28] sm:$0xff]  ;;  %v31_v8 = vld [vmem:[%s1084_s0 + $0x30] sm:$0xff]  ;;  %v734_v11 = vmov 0   ;;  %vm87_vm1 = vcmask 261120  }
   0x5   :  { %603 = vmatprep.mubr.msk.f32.mxu0 %vm732_vm0, %v733_v6  ;;  %v32_v9 = vld [vmem:[%s1084_s0 + $0x38] sm:$0xff]  ;;  %v69_v10 = vld [vmem:[%s1086_s2] sm:$0xff]  ;;  %659 = vset.pattern.permute.xlu1 %v734_v11  ;;  %v70_v13 = vld [vmem:[%s1086_s2 + $0x8] sm:$0xff]  ;;  %vm264_vm2 = vcmask 195584   ;;  %vm434_vm3 = vcmask 588800   ;;  %s736_s28 = smov [#allocation4]  }
   0x6   :  { %35 = vxpose.xlu0.b32.cont [2/9] (short) (narrow) %v26_v1, 32  ;;  %74 = vperm.xlu1 %659, %v69_v10   ;;  %v33_v12 = vld [vmem:[%s1084_s0 + $0x40] sm:$0xff]  ;;  %v71_v14 = vld [vmem:[%s1086_s2 + $0x10] sm:$0xff]  ;;  %v193_v16 = vld [vmem:[%s1088_s4 + $0x8] sm:$0xff]  ;;  %s533_s0 = sshll.u32 %s736_s28, 4  ;;  %vm512_vm6 = vcmask 581632   ;;  %s1018_s0 = int_to_ptr.vmem [resolvable:$true] %s533_s0 }
   0x7   :  { %v192_v15 = vld [vmem:[%s1088_s4] sm:$0xff]  ;;  %v197_v18 = vld [vmem:[%s1088_s4 + $0x28] sm:$0xff]  ;;  %v194_v19 = vld [vmem:[%s1088_s4 + $0x10] sm:$0xff]  ;;  %s737_s29 = smov [#allocation6]  }
   0x8   :  { %v196_v17 = vld [vmem:[%s1088_s4 + $0x20] sm:$0xff]  ;;  %v198_v20 = vld [vmem:[%s1088_s4 + $0x30] sm:$0xff]  ;;  %v201_v21 = vld [vmem:[%s1088_s4 + $0x48] sm:$0xff]  ;;  %s543_s30 = sshll.u32 %s737_s29, 4  ;;  %s1028_s30 = int_to_ptr.vmem [resolvable:$true] %s543_s30 }
   0x9   :  { %v195_v22 = vld [vmem:[%s1088_s4 + $0x18] sm:$0xff]  ;;  %v202_v24 = vld [vmem:[%s1088_s4 + $0x50] sm:$0xff]  ;;  %v66_v32 = vld [vmem:[%s1085_s1] sm:$0xff] }
   0xa   :  { %36 = vxpose.xlu0.b32.cont [3/9] (short) (narrow) %v27_v2, 32  ;;  %79 = vperm.xlu1 %659, %v70_v13   ;;  %v199_v23 = vld [vmem:[%s1088_s4 + $0x38] sm:$0xff]  ;;  %v67_v33 = vld [vmem:[%s1085_s1 + $0x8] sm:$0xff]  ;;  %v68_v34 = vld [vmem:[%s1085_s1 + $0x10] sm:$0xff] }
   0xb   :  { %v203_v25 = vld [vmem:[%s1088_s4 + $0x58] sm:$0xff]  ;;  %v180_v35 = vld [vmem:[%s1087_s3] sm:$0xff]  ;;  %v182_v36 = vld [vmem:[%s1087_s3 + $0x10] sm:$0xff] }
   0xc   :  { %621 = vmatprep.mubr.msk.f32.mxu1 %vm264_vm2, %v182_v36  ;;  %v200_v37 = vld [vmem:[%s1088_s4 + $0x40] sm:$0xff]  ;;  %v181_v54 = vld [vmem:[%s1087_s3 + $0x8] sm:$0xff]  ;;  %v183_v55 = vld [vmem:[%s1087_s3 + $0x18] sm:$0xff] }
   0xd   :  { %v184_v56 = vld [vmem:[%s1087_s3 + $0x20] sm:$0xff]  ;;  %v185_v57 = vld [vmem:[%s1087_s3 + $0x28] sm:$0xff]  ;;  %v186_v58 = vld [vmem:[%s1087_s3 + $0x30] sm:$0xff] }
   0xe   :  { %37 = vxpose.xlu0.b32.cont [4/9] (short) (narrow) %v28_v4, 32  ;;  %84 = vperm.xlu1 %659, %v71_v14   ;;  %v187_v59 = vld [vmem:[%s1087_s3 + $0x38] sm:$0xff]  ;;  %v188_v60 = vld [vmem:[%s1087_s3 + $0x40] sm:$0xff]  ;;  %v189_v61 = vld [vmem:[%s1087_s3 + $0x48] sm:$0xff] }
   0xf   :  { %v190_v62 = vld [vmem:[%s1087_s3 + $0x50] sm:$0xff]  ;;  %v191_v63 = vld [vmem:[%s1087_s3 + $0x58] sm:$0xff]  ;;  %s735_s3 = smov [#allocation2]  }
  0x10   :  { %s520_s27 = sshll.u32 %s735_s3, 4  ;;  %s1015_s27 = int_to_ptr.vmem [resolvable:$true] %s520_s27 }
  0x11   :  { %s661_s8 = scalar_lea.vmem %s1015_s27, 512  ;;  %p666_p1 = scmp.lt.s32.totalorder %s1015_s27, %s1015_s27 }
  0x12   :  { %38 = vxpose.xlu0.b32.cont [5/9] (short) (narrow) %v29_v5, 32  ;;  %206 = vperm.xlu1 %659, %v192_v15   ;;  %p662_p0 = scmp.ne.s32.totalorder %s1015_s27, %s661_s8  ;;  %p667_p2 = scmp.lt.s32.totalorder %s661_s8, %s661_s8 }
  0x14   :  { %p668_p3 = por %p667_p2, %p666_p1 }
  0x16   :  { %39 = vxpose.xlu0.b32.cont [6/9] (short) (narrow) %v30_v7, 32  ;;  %211 = vperm.xlu1 %659, %v193_v16   ;;  %p669_p4 = pnand %p668_p3, %p662_p0 }
  0x1a   :  { %40 = vxpose.xlu0.b32.cont [7/9] (short) (narrow) %v31_v8, 32  ;;  %226 = vperm.xlu1 %659, %v196_v17  }
  0x1e   :  { %41 = vxpose.xlu0.b32.cont [8/9] (short) (narrow) %v32_v9, 32  ;;  %231 = vperm.xlu1 %659, %v197_v18  }
  0x22   :  { %42 = vxpose.xlu0.b32.end [9/9] (short) (narrow) %v33_v12, 32  ;;  %216 = vperm.xlu1 %659, %v194_v19  }
  0x26   :  { %236 = vperm.xlu1 %659, %v198_v20  }
  0x2a   :  { %251 = vperm.xlu1 %659, %v201_v21  }
  0x2e   :  { %221 = vperm.xlu1 %659, %v195_v22  }
  0x32   :  { %241 = vperm.xlu1 %659, %v199_v23  }
  0x36   :  { %256 = vperm.xlu1 %659, %v202_v24  }
  0x3a   :  { %261 = vperm.xlu1 %659, %v203_v25  }
  0x4b   :  { %660 = vset.pattern.permute.xlu0 %v734_v11 }
  0x4c   :  { %246 = vperm.xlu0 %660, %v200_v37  }
  0x82   :  { %v852_v26 = vpop.trf.xlu0 }
  0x85   :  { %v75_v38 = vpop.permute.xlu1 %74 }
  0x86   :  { %v854_v27 = vpop.trf.xlu0 }
  0x87   :  { %v637_v28 = vpack.c.bf16 %v854_v27, %v852_v26 }
  0x89   :  { %638 = vmatpush3.bf16.msra.mxu0 %v637_v28  ;;  %v80_v41 = vpop.permute.xlu1 %79 }
  0x8a   :  { %v858_v29 = vpop.trf.xlu0  ;;  %639 = vmatprep.subr.bf16.mxu0 %v731_v3 }
  0x8d   :  { %v85_v48 = vpop.permute.xlu1 %84 }
  0x8e   :  { %v860_v30 = vpop.trf.xlu0 }
  0x8f   :  { %v640_v31 = vpack.c.bf16 %v860_v30, %v858_v29 }
  0x91   :  { %641 = vmatpush3.bf16.msra.mxu0 %v640_v31  ;;  %v207_v0 = vpop.permute.xlu1 %206 }
  0x94   :  { %604 = vmatmul.mubr.msk.f32.vlgmr.msra.gmra.mrb[0].mxu0 %vm87_vm1, %v66_v32 }
  0x95   :  { %606 = vmatprep.mubr.msk.f32.mxu0 %vm732_vm0, %v733_v6  ;;  %v212_v1 = vpop.permute.xlu1 %211 }
  0x98   :  { %607 = vmatmul.mubr.msk.f32.gmra.mrb[2].mxu0 %vm87_vm1, %v67_v33 }
  0x99   :  { %609 = vmatprep.mubr.msk.f32.mxu0 %vm732_vm0, %v733_v6  ;;  %v227_v2 = vpop.permute.xlu1 %226 }
  0x9c   :  { %610 = vmatmul.mubr.msk.f32.gmra.mrb[4].mxu0 %vm87_vm1, %v68_v34 }
  0x9d   :  { %618 = vmatprep.mubr.msk.f32.mxu0 %vm264_vm2, %v180_v35  ;;  %v232_v3 = vpop.permute.xlu1 %231 }
  0xa1   :  { %v217_v4 = vpop.permute.xlu1 %216 }
  0xa5   :  { %v237_v5 = vpop.permute.xlu1 %236 }
  0xa9   :  { %v252_v6 = vpop.permute.xlu1 %251 }
  0xad   :  { %v222_v7 = vpop.permute.xlu1 %221 }
  0xb1   :  { %v242_v18 = vpop.permute.xlu1 %241 }
 0x167   :  { %v163_v39 = vpop.f32.mrb[0].mxu0 }
 0x168   :  { %v605_v40 = vpop.f32.mrb[1].mxu0  ;;  %v164_v42 = vadd.f32 %v163_v39, %v75_v38 }
 0x16a   :  { %v177_v46 = vmax.f32 %v164_v42, 0.0 }
 0x16b   :  { %v168_v43 = vpop.f32.mrb[2].mxu0 }
 0x16c   :  { %v169_v44 = vadd.f32 %v168_v43, %v80_v41  ;;  %v608_v45 = vpop.f32.mrb[3].mxu0  ;;  %v257_v43 = vpop.permute.xlu1 %256 }
 0x16e   :  { %v178_v47 = vmax.f32 %v169_v44, 0.0 }
 0x16f   :  { %v173_v49 = vpop.f32.mrb[4].mxu0 }
 0x170   :  { %v642_v50 = vpack.c.bf16 %v178_v47, %v177_v46  ;;  %v174_v51 = vadd.f32 %v173_v49, %v85_v48  ;;  %v611_v52 = vpop.f32.mrb[5].mxu0 }
 0x172   :  { %v179_v53 = vmax.f32 %v174_v51, 0.0  ;;  %643 = vmatprep.subr.bf16.mxu0 %v642_v50  ;;  %646 = vmatprep.subr.bf16.mxu1 %v642_v50 }
 0x173   :  { %645 = vmatpush3.bf16.msra.mxu0 %v642_v50  ;;  %648 = vmatpush3.bf16.msra.mxu1 %v642_v50  ;;  %v247_v50 = vpop.permute.xlu0 %246 }
 0x174   :  { %616 = vmatprep.subr.mxu0 %v179_v53  ;;  %647 = vmatprep.subr.mxu1 %v179_v53 }
 0x177   :  { %617 = vmatpush3.msra.mxu0 %v179_v53  ;;  %649 = vmatpush3.msra.mxu1 %v179_v53 }
 0x178   :  { %619 = vmatmul.mubr.msk.f32.vlgmr.msra.gmra.mrb[6].mxu0 %vm264_vm2, %v181_v54  ;;  %622 = vmatmul.mubr.msk.f32.vlgmr.msra.gmra.mrb[0].mxu1 %vm264_vm2, %v183_v55 }
 0x179   :  { %624 = vmatprep.mubr.msk.f32.mxu1 %vm264_vm2, %v184_v56 }
 0x17c   :  { %625 = vmatmul.mubr.msk.f32.gmra.mrb[2].mxu1 %vm264_vm2, %v185_v57 }
 0x17d   :  { %627 = vmatprep.mubr.msk.f32.mxu1 %vm264_vm2, %v186_v58 }
 0x180   :  { %628 = vmatmul.mubr.msk.f32.gmra.mrb[4].mxu1 %vm264_vm2, %v187_v59 }
 0x181   :  { %630 = vmatprep.mubr.msk.f32.mxu1 %vm264_vm2, %v188_v60 }
 0x184   :  { %631 = vmatmul.mubr.msk.f32.gmra.mrb[6].mxu1 %vm264_vm2, %v189_v61 }
 0x185   :  { %633 = vmatprep.mubr.msk.f32.mxu1 %vm264_vm2, %v190_v62 }
 0x188   :  { %634 = vmatmul.mubr.msk.f32.gmra.mrb[8].mxu1 %vm264_vm2, %v191_v63 }
 0x24b   :  { %v620_v8 = vpop.f32.mrb[6].mxu0  ;;  %v623_v9 = vpop.f32.mrb[0].mxu1 }
 0x24c   :  { %v926_v10 = vadd.f32 %v620_v8, %v212_v1  ;;  %v928_v12 = vadd.f32 %v623_v9, %v222_v7  ;;  %v367_v13 = vpop.f32.mrb[7].mxu0  ;;  %v377_v14 = vpop.f32.mrb[1].mxu1 }
 0x24d   :  { %v930_v15 = vadd.f32 %v367_v13, %v207_v0  ;;  %v932_v16 = vadd.f32 %v377_v14, %v217_v4  ;;  %v262_v0 = vpop.permute.xlu1 %261 }
 0x24e   :  { %v427_v17 = vsub.f32 %v926_v10, %v854_v27  ;;  %v429_v19 = vsub.f32 %v928_v12, %v860_v30 }
 0x24f   :  { %v426_v20 = vsub.f32 %v930_v15, %v852_v26  ;;  %v428_v21 = vsub.f32 %v932_v16, %v858_v29  ;;  %v626_v22 = vpop.f32.mrb[2].mxu1 }
 0x250   :  { %v431_v23 = vmul.f32 %v427_v17, %v427_v17  ;;  %v942_v24 = vadd.f32 %v626_v22, %v232_v3  ;;  %v387_v25 = vpop.f32.mrb[3].mxu1  ;;  %v433_v35 = vmul.f32 %v429_v19, %v429_v19 }
 0x251   :  { %v430_v28 = vmul.f32 %v426_v20, %v426_v20  ;;  %v432_v31 = vmul.f32 %v428_v21, %v428_v21  ;;  %v944_v32 = vadd.f32 %v387_v25, %v227_v2 }
 0x252   :  { %v436_v33 = vsel %vm434_vm3, %v431_v23, 0.0  ;;  %v449_v34 = vsub.f32 %v942_v24, %v854_v27  ;;  %v440_v51 = vsel %vm434_vm3, %v433_v35, 0.0 }
 0x253   :  { %v435_v36 = vsel %vm434_vm3, %v430_v28, 0.0  ;;  %v448_v37 = vsub.f32 %v944_v32, %v852_v26  ;;  %v629_v38 = vpop.f32.mrb[4].mxu1  ;;  %v438_v44 = vsel %vm434_vm3, %v432_v31, 0.0 }
 0x254   :  { %v437_v39 = vadd.f32 %v436_v33, %v435_v36  ;;  %v453_v40 = vmul.f32 %v449_v34, %v449_v34  ;;  %v952_v41 = vadd.f32 %v629_v38, %v242_v18  ;;  %v397_v42 = vpop.f32.mrb[5].mxu1 }
 0x255   :  { %v452_v45 = vmul.f32 %v448_v37, %v448_v37  ;;  %v955_v46 = vadd.f32 %v397_v42, %v237_v5 }
 0x256   :  { %v439_v47 = vadd.f32 %v438_v44, %v437_v39  ;;  %v457_v48 = vsel %vm434_vm3, %v453_v40, 0.0  ;;  %v451_v49 = vsub.f32 %v952_v41, %v860_v30 }
 0x257   :  { %v456_v52 = vsel %vm434_vm3, %v452_v45, 0.0  ;;  %v450_v53 = vsub.f32 %v955_v46, %v858_v29  ;;  %v632_v54 = vpop.f32.mrb[6].mxu1 }
 0x258   :  { %v441_v55 = vadd.f32 %v440_v51, %v439_v47  ;;  %v458_v56 = vadd.f32 %v457_v48, %v456_v52  ;;  %v964_v57 = vadd.f32 %v632_v54, %v252_v6  ;;  %v407_v58 = vpop.f32.mrb[7].mxu1  ;;  %v455_v59 = vmul.f32 %v451_v49, %v451_v49 }
 0x259   :  { %v454_v60 = vmul.f32 %v450_v53, %v450_v53  ;;  %v408_v61 = vadd.f32 %v407_v58, %v247_v50 }
 0x25a   :  { %v442_v62 = vrot.slane %v441_v55, 4  ;;  %v478_v63 = vsub.f32 %v964_v57, %v854_v27  ;;  %v461_v9 = vsel %vm434_vm3, %v455_v59, 0.0 }
 0x25b   :  { %v459_v1 = vsel %vm434_vm3, %v454_v60, 0.0  ;;  %v477_v2 = vsub.f32 %v408_v61, %v852_v26  ;;  %v635_v3 = vpop.f32.mrb[8].mxu1 }
 0x25c   :  { %v443_v4 = vadd.f32 %v442_v62, %v441_v55  ;;  %v460_v5 = vadd.f32 %v459_v1, %v458_v56  ;;  %v482_v7 = vmul.f32 %v478_v63, %v478_v63  ;;  %v423_v8 = vadd.f32 %v635_v3, %v262_v0  ;;  %v417_v6 = vpop.f32.mrb[9].mxu1 }
 0x25d   :  { %v481_v13 = vmul.f32 %v477_v2, %v477_v2  ;;  %v418_v14 = vadd.f32 %v417_v6, %v257_v43 }
 0x25e   :  { %v444_v17 = vrot.slane %v443_v4, 2  ;;  %v462_v18 = vadd.f32 %v461_v9, %v460_v5  ;;  %v486_v19 = vsel %vm434_vm3, %v482_v7, 0.0  ;;  %v480_v27 = vsub.f32 %v423_v8, %v860_v30 }
 0x25f   :  { %v485_v20 = vsel %vm434_vm3, %v481_v13, 0.0  ;;  %v479_v26 = vsub.f32 %v418_v14, %v858_v29 }
 0x260   :  { %v463_v21 = vrot.slane %v462_v18, 4  ;;  %v487_v22 = vadd.f32 %v486_v19, %v485_v20  ;;  %v484_v23 = vmul.f32 %v480_v27, %v480_v27  ;;  %v445_v28 = vadd.f32 %v444_v17, %v443_v4 }
 0x261   :  { %v483_v25 = vmul.f32 %v479_v26, %v479_v26 }
 0x262   :  { %v464_v31 = vadd.f32 %v463_v21, %v462_v18  ;;  %v490_v36 = vsel %vm434_vm3, %v484_v23, 0.0  ;;  %v446_v37 = vrot.slane %v445_v28, 1 }
 0x263   :  { %v488_v33 = vsel %vm434_vm3, %v483_v25, 0.0 }
 0x264   :  { %v465_v34 = vrot.slane %v464_v31, 2  ;;  %v489_v35 = vadd.f32 %v488_v33, %v487_v22  ;;  %v447_v42 = vadd.f32 %v446_v37, %v445_v28 }
 0x266   :  { %v466_v38 = vadd.f32 %v465_v34, %v464_v31  ;;  %v491_v39 = vadd.f32 %v490_v36, %v489_v35 }
 0x268   :  { %v467_v30 = vrot.slane %v466_v38, 1  ;;  %v492_v40 = vrot.slane %v491_v39, 4 }
 0x26a   :  { %v468_v43 = vadd.f32 %v467_v30, %v466_v38  ;;  %v493_v29 = vadd.f32 %v492_v40, %v491_v39 }
 0x26c   :  { %vm977_vm4 = vcmp.lt.f32.partialorder %v468_v43, %v447_v42  ;;  %v494_v45 = vrot.slane %v493_v29, 2 }
 0x26d   :  { %v474_v47 = vsel %vm977_vm4, %v955_v46, %v932_v16  ;;  %v476_v48 = vsel %vm977_vm4, %v468_v43, %v447_v42  ;;  %v472_v49 = vsel %vm977_vm4, %v944_v32, %v930_v15  ;;  %v473_v50 = vsel %vm977_vm4, %v942_v24, %v926_v10 }
 0x26e   :  { %v495_v51 = vadd.f32 %v494_v45, %v493_v29  ;;  %v475_v52 = vsel %vm977_vm4, %v952_v41, %v928_v12  ;;  %v470_v10 = vsel %vm977_vm4, 1, %v734_v11 }
 0x270   :  { %v496_v16 = vrot.slane %v495_v51, 1 }
 0x272   :  { %v497_v46 = vadd.f32 %v496_v16, %v495_v51 }
 0x274   :  { %vm999_vm5 = vcmp.lt.f32.partialorder %v497_v46, %v476_v48 }
 0x275   :  { %v503_v12 = vsel %vm999_vm5, %v418_v14, %v474_v47  ;;  %v506_v15 = vsel %vm999_vm5, %v497_v46, %v476_v48  ;;  %v501_v24 = vsel %vm999_vm5, %v408_v61, %v472_v49  ;;  %v502_v32 = vsel %vm999_vm5, %v964_v57, %v473_v50 }
 0x276   :  { %509 = vst.msk [vmem:[#allocation2 + $0x10] sm:$0xff] %vm434_vm3, %v503_v12  ;;  %v511_v11 = vmul.f32 0.03125, %v506_v15  ;;  %v504_v41 = vsel %vm999_vm5, %v423_v8, %v475_v52  ;;  %507 = vst.msk [vmem:[#allocation2] sm:$0xff] %vm434_vm3, %v501_v24  ;;  %v505_v54 = vsel %vm999_vm5, 2, %v470_v10 }
 0x277   :  { %508 = vst.msk [vmem:[#allocation2 + $0x8] sm:$0xff] %vm434_vm3, %v502_v32  ;;  %510 = vst.msk [vmem:[#allocation2 + $0x18] sm:$0xff] %vm434_vm3, %v504_v41 }
 0x278   :  { %514 = vst.msk [vmem:[#allocation6] sm:$0x1] %vm512_vm6, %v505_v54  ;;  %513 = vst.msk [vmem:[#allocation4] sm:$0x1] %vm512_vm6, %v511_v11 }
 0x279   :  { %672 = shalt.err (!%p669_p4)
}
 0x27a   :  { %s673_s4 = scalar_lea.hbm %s1089_s5, 512 }
 0x27b   :  { %p674_p5 = scmp.ne.s32.totalorder %s1089_s5, %s673_s4  ;;  %p677_p6 = scmp.lt.u32.totalorder %s673_s4, %s1089_s5 }
 0x27d   :  { %p679_p7 = pnand %p677_p6, %p674_p5 }
 0x27f   :  { %682 = shalt.err (!%p679_p7)
}
 0x280   :  { %s738_s13 = smov 128   ;;  %s739_s14 = smov 8  }
 0x281   :  { %526 = dma.vmem_to_hbm [thread:$0]  %s1015_s27, 512, %s1089_s5, [#allocation3], %s738_s13, %s738_s13, %s739_s14  }
 0x282   :  { %s683_s17 = scalar_lea.vmem %s1018_s0, 16  ;;  %s687_s18 = scalar_lea.vmem %s1018_s0, 32 }
 0x283   :  { %p684_p8 = scmp.ne.s32.totalorder %s1018_s0, %s683_s17  ;;  %p688_p9 = scmp.lt.s32.totalorder %s1018_s0, %s1018_s0 }
 0x284   :  { %p689_p10 = scmp.lt.s32.totalorder %s687_s18, %s683_s17 }
 0x286   :  { %p690_p11 = por %p689_p10, %p688_p9 }
 0x288   :  { %p691_p12 = pnand %p690_p11, %p684_p8 }
 0x28a   :  { %694 = shalt.err (!%p691_p12)
}
 0x28b   :  { %s695_s21 = scalar_lea.hbm %s1090_s6, 16 }
 0x28c   :  { %p696_p13 = scmp.ne.s32.totalorder %s1090_s6, %s695_s21  ;;  %p699_p0 = scmp.lt.u32.totalorder %s695_s21, %s1090_s6 }
 0x28e   :  { %p701_p1 = pnand %p699_p0, %p696_p13 }
 0x290   :  { %704 = shalt.err (!%p701_p1)
}
 0x291   :  { %536 = dma.vmem_to_hbm [thread:$0]  %s1018_s0, 16, %s1090_s6, [#allocation5]  }
 0x292   :  { %s705_s3 = scalar_lea.vmem %s1028_s30, 16  ;;  %s709_s27 = scalar_lea.vmem %s1028_s30, 32 }
 0x293   :  { %p706_p2 = scmp.ne.s32.totalorder %s1028_s30, %s705_s3  ;;  %p710_p3 = scmp.lt.s32.totalorder %s1028_s30, %s1028_s30 }
 0x294   :  { %p711_p4 = scmp.lt.s32.totalorder %s709_s27, %s705_s3 }
 0x296   :  { %p712_p5 = por %p711_p4, %p710_p3 }
 0x298   :  { %p713_p6 = pnand %p712_p5, %p706_p2 }
 0x29a   :  { %716 = shalt.err (!%p713_p6)
}
 0x29b   :  { %s717_s8 = scalar_lea.hbm %s1091_s7, 16 }
 0x29c   :  { %p718_p7 = scmp.ne.s32.totalorder %s1091_s7, %s717_s8  ;;  %p721_p8 = scmp.lt.u32.totalorder %s717_s8, %s1091_s7 }
 0x29e   :  { %p723_p9 = pnand %p721_p8, %p718_p7 }
 0x2a0   :  { %726 = shalt.err (!%p723_p9)
}
 0x2a1   :  { %546 = dma.vmem_to_hbm [thread:$0]  %s1028_s30, 16, %s1091_s7, [#allocation5]  }
 0x2a2   :  { %727 = dma.done.wait [#allocation3], 512  }
 0x2a3   :  { %728 = vsyncadd [#allocation3], 4294966784 }
 0x2a4   :  { %729 = dma.done.wait [#allocation5], 32  }
 0x2a5   :  { %730 = vsyncadd [#allocation5], 4294967264 }
 0x2a6   :  { %556 = vsyncpa [#allocation3], 1 }
 0x2a7   :  { %557 = vsyncpa [#allocation5], 1 }

</bundles_post_ra>
